<compile_context>
chip_gen: v6e
topology: v6e:2x2x1
jax: 0.10.0
libtpu: 0.0.40
codegen_flags: <defaults>
</compile_context>

<pallas_src>
import functools

import jax
import jax.numpy as jnp
from jax.experimental import pallas as pl
from jax.experimental.pallas import tpu as pltpu


def _cdiv(a, b):
    return (a + b - 1) // b


def _round_up(x, m):
    return ((x + m - 1) // m) * m


def _pad2(a, rows, cols, value=0.0):
    pr, pc = rows - a.shape[0], cols - a.shape[1]
    if pr or pc:
        a = jnp.pad(a, ((0, pr), (0, pc)), constant_values=value)
    return a


def _num_tensorcores_per_chip():
    """1 TC/chip on v5e/v6e, 2 on v7x (megacore).  Best-effort detection."""
    try:
        kind = jax.devices()[0].device_kind.lower()
    except Exception:
        return 1
    return 2 if "v7" in kind else 1


def actor_kernel(x_ref, w1_ref, b1_ref, w2_ref, b2_ref, w3_ref, b3_ref, out_ref):
    cdt = w1_ref.dtype  # compute dtype for MXU inputs (bf16 or f32)

    # State tile arrives at native (tb, d_in) in f32; cast in VMEM (no HBM cost).
    x = x_ref[...].astype(cdt)

    # fc1 + ReLU (f32 accumulate, f32 bias).
    h1 = jnp.dot(x, w1_ref[...], preferred_element_type=jnp.float32) + b1_ref[...]
    h1 = jnp.maximum(h1, 0.0).astype(cdt)

    # fc2 + ReLU.
    h2 = jnp.dot(h1, w2_ref[...], preferred_element_type=jnp.float32) + b2_ref[...]
    h2 = jnp.maximum(h2, 0.0).astype(cdt)

    # pi head + numerically stable softmax over the (padded, lane-dense) action
    # axis.  Padded action columns carry bias = -1e30 -> exp underflows to 0.
    logits = jnp.dot(h2, w3_ref[...], preferred_element_type=jnp.float32) + b3_ref[...]
    m = jnp.max(logits, axis=-1, keepdims=True)
    e = jnp.exp(logits - m)
    denom = jnp.sum(e, axis=-1, keepdims=True)
    # Exact normalization on the (tb, 1) denominator (negligible cost); rows
    # sum to 1 in f32 before the (optional) bf16 output cast.
    out_ref[...] = (e / denom).astype(out_ref.dtype)


def prepare_params(params, *, use_bf16=True):
    """Pad/cast parameters to kernel layout ONCE (at init / after each update).

    params: dict of w1,b1,w2,b2,w3,b3 with w*: (in, out), b*: (1, out) in f32.
    Returns a dict of padded/cast arrays ready for actor_forward.
    """
    w1, b1 = params["w1"], params["b1"]
    w2, b2 = params["w2"], params["b2"]
    w3, b3 = params["w3"], params["b3"]

    d_in, h1_dim = w1.shape
    h2_dim = w2.shape[1]
    n_actions = w3.shape[1]

    h1p = _round_up(h1_dim, 128)
    h2p = _round_up(h2_dim, 128)
    ap = _round_up(n_actions, 128)

    cdt = jnp.bfloat16 if use_bf16 else jnp.float32

    return {
        # W1 keeps its native d_in rows (state feature dim is NOT padded).
        "w1": _pad2(w1, d_in, h1p).astype(cdt),
        "b1": _pad2(b1, 1, h1p).astype(jnp.float32),
        "w2": _pad2(w2, h1p, h2p).astype(cdt),
        "b2": _pad2(b2, 1, h2p).astype(jnp.float32),
        "w3": _pad2(w3, h2p, ap).astype(cdt),
        # Padded action columns get a huge negative bias so softmax gives them 0.
        "b3": _pad2(b3, 1, ap, value=-1e30).astype(jnp.float32),
    }


@functools.partial(jax.jit, static_argnames=("n_actions", "tile_b", "min_tiles"))
def actor_forward(state, prepped, *, n_actions, tile_b=1024, min_tiles=None):
    """state: (B, input_dims) f32; prepped: output of prepare_params()."""
    w1_p, b1_p = prepped["w1"], prepped["b1"]
    w2_p, b2_p = prepped["w2"], prepped["b2"]
    w3_p, b3_p = prepped["w3"], prepped["b3"]

    B, d_in = state.shape
    assert w1_p.shape[0] == d_in, "state feature dim must match prepared W1"
    h1p = w1_p.shape[1]
    h2p = w2_p.shape[1]
    ap = w3_p.shape[1]

    # Grid-first batch tiling: minimal padding, balanced tiles.  On v7x make
    # sure there are >=2 tiles (when B allows) so both TensorCores are used.
    if min_tiles is None:
        min_tiles = _num_tensorcores_per_chip()
    grid_n = max(min(min_tiles, _cdiv(B, 16)), _cdiv(B, tile_b))
    tb = _round_up(_cdiv(B, grid_n), 16)  # multiple of 16 (bf16 sublane packing)
    bp = grid_n * tb

    # Only the batch dim is padded (feature dim stays native).
    x_p = _pad2(state, bp, d_in)

    out_dtype = jnp.bfloat16 if w1_p.dtype == jnp.bfloat16 else jnp.float32

    # NOTE: weight/bias index maps are constant (0, 0), so they are DMA'd once
    # and stay VMEM-resident across batch tiles (blocks are not re-fetched when
    # the block index does not change between grid steps).
    out_padded = pl.pallas_call(
        actor_kernel,
        out_shape=jax.ShapeDtypeStruct((bp, ap), out_dtype),
        grid=(grid_n,),
        in_specs=[
            pl.BlockSpec((tb, d_in), lambda i: (i, 0)),    # state tile (pipelined)
            pl.BlockSpec((d_in, h1p), lambda i: (0, 0)),   # W1 resident
            pl.BlockSpec((1, h1p), lambda i: (0, 0)),      # b1 resident
            pl.BlockSpec((h1p, h2p), lambda i: (0, 0)),    # W2 resident
            pl.BlockSpec((1, h2p), lambda i: (0, 0)),      # b2 resident
            pl.BlockSpec((h2p, ap), lambda i: (0, 0)),     # W3 resident
            pl.BlockSpec((1, ap), lambda i: (0, 0)),       # b3 resident
        ],
        out_specs=pl.BlockSpec((tb, ap), lambda i: (i, 0)),
        compiler_params=pltpu.CompilerParams(
            dimension_semantics=("parallel",),
        ),
    )(x_p, w1_p, b1_p, w2_p, b2_p, w3_p, b3_p)

    # Slice off batch/action padding; return f32 probabilities (tiny cast).
    return out_padded[:B, :n_actions].astype(jnp.float32)


def init_params(key, input_dims, fc1_dim, fc2_dim, n_actions):
    """Deterministic init mimicking nn.Linear's U(-1/sqrt(fan_in), 1/sqrt(fan_in))."""
    ks = jax.random.split(key, 6)

    def lin(kw, kb, fan_in, fan_out):
        bound = 1.0 / jnp.sqrt(jnp.float32(fan_in))
        w = jax.random.uniform(kw, (fan_in, fan_out), jnp.float32, -bound, bound)
        b = jax.random.uniform(kb, (1, fan_out), jnp.float32, -bound, bound)
        return w, b

    w1, b1 = lin(ks[0], ks[1], input_dims, fc1_dim)
    w2, b2 = lin(ks[2], ks[3], fc1_dim, fc2_dim)
    w3, b3 = lin(ks[4], ks[5], fc2_dim, n_actions)
    return {"w1": w1, "b1": b1, "w2": w2, "b2": b2, "w3": w3, "b3": b3}


def actor_forward_ref(state, params):
    h1 = jax.nn.relu(state @ params["w1"] + params["b1"])
    h2 = jax.nn.relu(h1 @ params["w2"] + params["b2"])
    return jax.nn.softmax(h2 @ params["w3"] + params["b3"], axis=-1)


if __name__ == "__main__":
    # TODO(synk): optimizer (Adam), checkpointing, and device placement from the
    # PyTorch module are host-side training utilities, not part of forward().
    key = jax.random.PRNGKey(0)
    k_param, k_state, k_state_big = jax.random.split(key, 3)

    batch = 2
    input_dims = 16
    fc1_dim = 64
    fc2_dim = 64
    n_actions = 8

    raw_params = init_params(k_param, input_dims, fc1_dim, fc2_dim, n_actions)
    prepped = prepare_params(raw_params, use_bf16=True)  # one-time layout/cast

    # Small-batch check (matches the module's typical per-step call).
    state = jax.random.normal(k_state, (batch, input_dims), jnp.float32)
    out = jax.block_until_ready(actor_forward(state, prepped, n_actions=n_actions))
    ref = actor_forward_ref(state, raw_params)
    assert out.shape == (batch, n_actions)
    assert jnp.allclose(jnp.sum(out, axis=-1), 1.0, atol=5e-3)
    assert jnp.allclose(out, ref, atol=3e-2, rtol=3e-2)

    # Larger-batch check with a small tile: exercises grid > 1, grid-first
    # batch padding (300 -> 336 rows @ tb=112, not 512), and resident weights.
    big_batch = 300
    state_big = jax.random.normal(k_state_big, (big_batch, input_dims), jnp.float32)
    out_big = jax.block_until_ready(
        actor_forward(state_big, prepped, n_actions=n_actions, tile_b=128)
    )
    ref_big = actor_forward_ref(state_big, raw_params)
    assert out_big.shape == (big_batch, n_actions)
    assert jnp.allclose(jnp.sum(out_big, axis=-1), 1.0, atol=5e-3)
    assert jnp.allclose(out_big, ref_big, atol=3e-2, rtol=3e-2)

    # Default large-tile path (grid-first sizing, >=2 tiles auto on v7x).
    out_def = jax.block_until_ready(
        actor_forward(state_big, prepped, n_actions=n_actions)
    )
    assert out_def.shape == (big_batch, n_actions)
    assert jnp.allclose(out_def, ref_big, atol=3e-2, rtol=3e-2)

    print("KERNEL_OK")
</pallas_src>

<mosaic_0001>
module attributes {stable_mosaic.version = 11 : i64} {
  func.func @actor_kernel(%arg0: i32, %arg1: memref<16x16xf32, #tpu.memory_space<vmem>>, %arg2: memref<16x128xbf16, #tpu.memory_space<vmem>>, %arg3: memref<1x128xf32, #tpu.memory_space<vmem>>, %arg4: memref<128x128xbf16, #tpu.memory_space<vmem>>, %arg5: memref<1x128xf32, #tpu.memory_space<vmem>>, %arg6: memref<128x128xbf16, #tpu.memory_space<vmem>>, %arg7: memref<1x128xf32, #tpu.memory_space<vmem>>, %arg8: memref<16x128xbf16, #tpu.memory_space<vmem>>) attributes {dimension_semantics = [#tpu.dimension_semantics<parallel>], iteration_bounds = array<i64: 1>, scalar_prefetch = 0 : i64, scratch_operands = 0 : i64, tpu.core_type = #tpu.core_type<tc>, window_params = [{transform_indices = @transform_0, window_bounds = array<i64: 16, 16>}, {pipeline_mode = #tpu.pipeline_mode<synchronous>, transform_indices = @transform_1, window_bounds = array<i64: 16, 128>}, {pipeline_mode = #tpu.pipeline_mode<synchronous>, transform_indices = @transform_2, window_bounds = array<i64: 1, 128>}, {pipeline_mode = #tpu.pipeline_mode<synchronous>, transform_indices = @transform_3, window_bounds = array<i64: 128, 128>}, {pipeline_mode = #tpu.pipeline_mode<synchronous>, transform_indices = @transform_4, window_bounds = array<i64: 1, 128>}, {pipeline_mode = #tpu.pipeline_mode<synchronous>, transform_indices = @transform_5, window_bounds = array<i64: 128, 128>}, {pipeline_mode = #tpu.pipeline_mode<synchronous>, transform_indices = @transform_6, window_bounds = array<i64: 1, 128>}, {transform_indices = @transform_7, window_bounds = array<i64: 16, 128>}]} {
    %c0 = arith.constant 0 : index
    %c0_0 = arith.constant 0 : index
    %0 = vector.load %arg1[%c0, %c0_0] : memref<16x16xf32, #tpu.memory_space<vmem>>, vector<16x16xf32>
    %1 = arith.truncf %0 : vector<16x16xf32> to vector<16x16xbf16>
    %c0_1 = arith.constant 0 : index
    %c0_2 = arith.constant 0 : index
    %2 = vector.load %arg2[%c0_1, %c0_2] : memref<16x128xbf16, #tpu.memory_space<vmem>>, vector<16x128xbf16>
    %cst = arith.constant dense<0.000000e+00> : vector<16x128xf32>
    %3 = tpu.matmul %1, %2, %cst {dimension_numbers = #tpu.dot_dimension_numbers<[1], [0], [0], [1], [0, 0, 1, 1], [], []>} : vector<16x16xbf16>, vector<16x128xbf16>, vector<16x128xf32> -> vector<16x128xf32>
    %c0_3 = arith.constant 0 : index
    %c0_4 = arith.constant 0 : index
    %4 = vector.load %arg3[%c0_3, %c0_4] : memref<1x128xf32, #tpu.memory_space<vmem>>, vector<1x128xf32>
    %5 = vector.broadcast %4 : vector<1x128xf32> to vector<16x128xf32>
    %6 = arith.addf %3, %5 : vector<16x128xf32>
    %cst_5 = arith.constant 0.000000e+00 : f32
    %7 = vector.broadcast %cst_5 : f32 to vector<16x128xf32>
    %8 = arith.maximumf %6, %7 : vector<16x128xf32>
    %9 = arith.truncf %8 : vector<16x128xf32> to vector<16x128xbf16>
    %c0_6 = arith.constant 0 : index
    %c0_7 = arith.constant 0 : index
    %10 = vector.load %arg4[%c0_6, %c0_7] : memref<128x128xbf16, #tpu.memory_space<vmem>>, vector<128x128xbf16>
    %cst_8 = arith.constant dense<0.000000e+00> : vector<16x128xf32>
    %11 = tpu.matmul %9, %10, %cst_8 {dimension_numbers = #tpu.dot_dimension_numbers<[1], [0], [0], [1], [0, 0, 1, 1], [], []>} : vector<16x128xbf16>, vector<128x128xbf16>, vector<16x128xf32> -> vector<16x128xf32>
    %c0_9 = arith.constant 0 : index
    %c0_10 = arith.constant 0 : index
    %12 = vector.load %arg5[%c0_9, %c0_10] : memref<1x128xf32, #tpu.memory_space<vmem>>, vector<1x128xf32>
    %13 = vector.broadcast %12 : vector<1x128xf32> to vector<16x128xf32>
    %14 = arith.addf %11, %13 : vector<16x128xf32>
    %cst_11 = arith.constant 0.000000e+00 : f32
    %15 = vector.broadcast %cst_11 : f32 to vector<16x128xf32>
    %16 = arith.maximumf %14, %15 : vector<16x128xf32>
    %17 = arith.truncf %16 : vector<16x128xf32> to vector<16x128xbf16>
    %c0_12 = arith.constant 0 : index
    %c0_13 = arith.constant 0 : index
    %18 = vector.load %arg6[%c0_12, %c0_13] : memref<128x128xbf16, #tpu.memory_space<vmem>>, vector<128x128xbf16>
    %cst_14 = arith.constant dense<0.000000e+00> : vector<16x128xf32>
    %19 = tpu.matmul %17, %18, %cst_14 {dimension_numbers = #tpu.dot_dimension_numbers<[1], [0], [0], [1], [0, 0, 1, 1], [], []>} : vector<16x128xbf16>, vector<128x128xbf16>, vector<16x128xf32> -> vector<16x128xf32>
    %c0_15 = arith.constant 0 : index
    %c0_16 = arith.constant 0 : index
    %20 = vector.load %arg7[%c0_15, %c0_16] : memref<1x128xf32, #tpu.memory_space<vmem>>, vector<1x128xf32>
    %21 = vector.broadcast %20 : vector<1x128xf32> to vector<16x128xf32>
    %22 = arith.addf %19, %21 : vector<16x128xf32>
    %cst_17 = arith.constant dense<0xFF800000> : vector<16xf32>
    %23 = vector.multi_reduction <maximumf>, %22, %cst_17 [1] : vector<16x128xf32> to vector<16xf32>
    %24 = vector.shape_cast %23 : vector<16xf32> to vector<16x1xf32>
    %25 = vector.broadcast %24 : vector<16x1xf32> to vector<16x128xf32>
    %26 = arith.subf %22, %25 : vector<16x128xf32>
    %27 = math.exp %26 : vector<16x128xf32>
    %cst_18 = arith.constant dense<0.000000e+00> : vector<16xf32>
    %28 = vector.multi_reduction <add>, %27, %cst_18 [1] : vector<16x128xf32> to vector<16xf32>
    %29 = vector.shape_cast %28 : vector<16xf32> to vector<16x1xf32>
    %30 = vector.broadcast %29 : vector<16x1xf32> to vector<16x128xf32>
    %31 = arith.divf %27, %30 : vector<16x128xf32>
    %32 = arith.truncf %31 : vector<16x128xf32> to vector<16x128xbf16>
    %c0_19 = arith.constant 0 : index
    %c0_20 = arith.constant 0 : index
    %33 = vector.load %arg8[%c0_19, %c0_20] : memref<16x128xbf16, #tpu.memory_space<vmem>>, vector<16x128xbf16>
    tpu.vector_store %arg8[%c0_19, %c0_20], %32 {strides = array<i32>} : memref<16x128xbf16, #tpu.memory_space<vmem>>, vector<16x128xbf16>,
    return
  }
  func.func @transform_0(%arg0: i32) -> (i32, i32) {
    %c0_i32 = arith.constant 0 : i32
    %c0_i32_0 = arith.constant 0 : i32
    return %arg0, %c0_i32 : i32, i32
  }
  func.func @transform_1(%arg0: i32) -> (i32, i32) {
    %c0_i32 = arith.constant 0 : i32
    %c0_i32_0 = arith.constant 0 : i32
    %c0_i32_1 = arith.constant 0 : i32
    return %c0_i32, %c0_i32_0 : i32, i32
  }
  func.func @transform_2(%arg0: i32) -> (i32, i32) {
    %c0_i32 = arith.constant 0 : i32
    %c0_i32_0 = arith.constant 0 : i32
    %c0_i32_1 = arith.constant 0 : i32
    return %c0_i32, %c0_i32_0 : i32, i32
  }
  func.func @transform_3(%arg0: i32) -> (i32, i32) {
    %c0_i32 = arith.constant 0 : i32
    %c0_i32_0 = arith.constant 0 : i32
    %c0_i32_1 = arith.constant 0 : i32
    return %c0_i32, %c0_i32_0 : i32, i32
  }
  func.func @transform_4(%arg0: i32) -> (i32, i32) {
    %c0_i32 = arith.constant 0 : i32
    %c0_i32_0 = arith.constant 0 : i32
    %c0_i32_1 = arith.constant 0 : i32
    return %c0_i32, %c0_i32_0 : i32, i32
  }
  func.func @transform_5(%arg0: i32) -> (i32, i32) {
    %c0_i32 = arith.constant 0 : i32
    %c0_i32_0 = arith.constant 0 : i32
    %c0_i32_1 = arith.constant 0 : i32
    return %c0_i32, %c0_i32_0 : i32, i32
  }
  func.func @transform_6(%arg0: i32) -> (i32, i32) {
    %c0_i32 = arith.constant 0 : i32
    %c0_i32_0 = arith.constant 0 : i32
    %c0_i32_1 = arith.constant 0 : i32
    return %c0_i32, %c0_i32_0 : i32, i32
  }
  func.func @transform_7(%arg0: i32) -> (i32, i32) {
    %c0_i32 = arith.constant 0 : i32
    %c0_i32_0 = arith.constant 0 : i32
    return %arg0, %c0_i32 : i32, i32
  }
}

</mosaic_0001>

<bundles_post_ra>
// kernel: actor_forward.1
= control target key start
LH: loop header
LB: loop body
LE: loop exit
PB: predicated region body
PF: predicated region fallthrough
CT: control target
= control target key end

     0   :  { %12 = vsyncpa [#allocation3], 0  ;;  %s649_s0 = inlined_call_operand.vmem [shape: f32[16,16], index: 0, kind: input, shape index: {}]   ;;  %s650_s1 = inlined_call_operand.vmem [shape: bf16[16,128], index: 1, kind: input, shape index: {}]   ;;  %s651_s2 = inlined_call_operand.vmem [shape: f32[1,128], index: 2, kind: input, shape index: {}]   ;;  %s652_s3 = inlined_call_operand.hbm [shape: bf16[128,128], index: 3, kind: input, shape index: {}]   ;;  %s653_s4 = inlined_call_operand.vmem [shape: f32[1,128], index: 4, kind: input, shape index: {}]   ;;  %s654_s5 = inlined_call_operand.hbm [shape: bf16[128,128], index: 5, kind: input, shape index: {}]   ;;  %s655_s6 = inlined_call_operand.vmem [shape: f32[1,128], index: 6, kind: input, shape index: {}]   ;;  %s656_s7 = inlined_call_operand.vmem [shape: bf16[16,128], index: 7, kind: output, shape index: {}]  }
   0x1   :  { %13 = vsyncpa [#allocation5], 0  ;;  %s553_s24 = smov [#allocation2]  }
   0x2   :  { %s25_s25 = sshll.u32 %s553_s24, 4  ;;  %s26_s25 = int_to_ptr.vmem [resolvable:$true] %s25_s25 }
   0x3   :  { %s517_s26 = scalar_lea.vmem %s26_s25, 1024  ;;  %p522_p1 = scmp.lt.s32.totalorder %s26_s25, %s26_s25 }
   0x4   :  { %p518_p0 = scmp.ne.s32.totalorder %s26_s25, %s517_s26  ;;  %p523_p2 = scmp.lt.s32.totalorder %s517_s26, %s517_s26 }
   0x6   :  { %p524_p3 = por %p523_p2, %p522_p1 }
   0x8   :  { %p525_p4 = pnand %p524_p3, %p518_p0 }
   0xa   :  { %528 = shalt.err (!%p525_p4)
}
   0xb   :  { %s554_s27 = smov 64   ;;  %s555_s28 = smov 4  }
   0xc   :  { %31 = dma.hbm_to_vmem [thread:$0]  %s652_s3, 1024, %s26_s25, [#allocation3], %s554_s27, %s554_s27, %s555_s28  }
   0xd   :  { %s556_s8 = smov [#allocation4]  }
   0xe   :  { %s39_s9 = sshll.u32 %s556_s8, 4  ;;  %s40_s9 = int_to_ptr.vmem [resolvable:$true] %s39_s9 }
   0xf   :  { %s537_s10 = scalar_lea.vmem %s40_s9, 1024  ;;  %p542_p6 = scmp.lt.s32.totalorder %s40_s9, %s40_s9 }
  0x10   :  { %p538_p5 = scmp.ne.s32.totalorder %s40_s9, %s537_s10  ;;  %p543_p7 = scmp.lt.s32.totalorder %s537_s10, %s537_s10 }
  0x12   :  { %p544_p8 = por %p543_p7, %p542_p6 }
  0x14   :  { %p545_p9 = pnand %p544_p8, %p538_p5 }
  0x16   :  { %548 = shalt.err (!%p545_p9)
}
  0x17   :  { %45 = dma.hbm_to_vmem [thread:$0]  %s654_s5, 1024, %s40_s9, [#allocation5], %s554_s27, %s554_s27, %s555_s28  }
  0x18   :  { %549 = dma.done.wait [#allocation3], 1024  }
  0x19   :  { %550 = vsyncadd [#allocation3], 4294966272 }
  0x1a   :  { %551 = dma.done.wait [#allocation5], 1024  }
  0x1b   :  { %552 = vsyncadd [#allocation5], 4294966272  ;;  %v557_v0 = vmov 0.0   ;;  %vm558_vm0 = vmmov 0   ;;  %v484_v1 = vld [vmem:[%s650_s1] sm:$0xff]   ;;  %v56_v3 = vld [vmem:[%s649_s0 + $0x8] sm:$0xff] }
  0x1c   :  { %432 = vmatprep.subr.bf16.mxu0 %v557_v0  ;;  %434 = vmatprep.mubr.msk.bf16.mxu0 %vm558_vm0, %v557_v0  ;;  %v55_v2 = vld [vmem:[%s649_s0] sm:$0xff]  ;;  %vm73_vm1 = vcmask 130048   ;;  %v485_v5 = vld [vmem:[#allocation2 + $0x38] sm:$0xff]   ;;  %v486_v6 = vld [vmem:[#allocation2 + $0x30] sm:$0xff]  }
  0x1d   :  { %438 = vmatprep.subr.bf16.mxu1 %v557_v0  ;;  %454 = vmatprep.mubr.msk.bf16.mxu1 %vm558_vm0, %v557_v0  ;;  %v57_v4 = vpack.c.bf16 %v56_v3, %v55_v2  ;;  %v487_v7 = vld [vmem:[#allocation2 + $0x28] sm:$0xff]   ;;  %v488_v8 = vld [vmem:[#allocation2 + $0x20] sm:$0xff]   ;;  %v489_v9 = vld [vmem:[#allocation2 + $0x18] sm:$0xff]  }
  0x1e   :  { %433 = vmatpush3.bf16.msra.mxu0 %v484_v1  ;;  %439 = vmatpush3.bf16.msra.mxu1 %v485_v5  ;;  %v490_v10 = vld [vmem:[#allocation2 + $0x10] sm:$0xff]   ;;  %v491_v11 = vld [vmem:[#allocation2 + $0x8] sm:$0xff]   ;;  %v492_v12 = vld [vmem:[#allocation2] sm:$0xff]  }
  0x1f   :  { %458 = vmatprep.subr.bf16.mxu0 %v557_v0  ;;  %440 = vmatprep.subr.bf16.mxu1 %v557_v0  ;;  %v493_v13 = vld [vmem:[#allocation4 + $0x38] sm:$0xff]   ;;  %v494_v14 = vld [vmem:[#allocation4 + $0x30] sm:$0xff]   ;;  %v495_v15 = vld [vmem:[#allocation4 + $0x28] sm:$0xff]  }
  0x20   :  { %v496_v16 = vld [vmem:[#allocation4 + $0x20] sm:$0xff]   ;;  %v497_v17 = vld [vmem:[#allocation4 + $0x18] sm:$0xff]   ;;  %v498_v28 = vld [vmem:[#allocation4 + $0x10] sm:$0xff]  }
  0x21   :  { %435 = vmatmul.mubr.msk.bf16.vlgmr.msra.gmra.mxu0 %vm73_vm1, %v57_v4  ;;  %v382_v18 = vld [vmem:[%s651_s2] ss:$0 sm:$0xff]  ;;  %v499_v29 = vld [vmem:[#allocation4 + $0x8] sm:$0xff]  }
  0x22   :  { %474 = vmatprep.mubr.msk.bf16.mxu0 %vm558_vm0, %v557_v0  ;;  %441 = vmatpush3.bf16.msra.mxu1 %v486_v6  ;;  %v500_v30 = vld [vmem:[#allocation4] sm:$0xff]  }
  0x23   :  { %442 = vmatprep.subr.bf16.mxu1 %v557_v0  ;;  %459 = vmatpush3.bf16.msra.mxu0 %v493_v13  ;;  %v385_v31 = vld [vmem:[%s653_s4] ss:$0 sm:$0xff] }
  0x24   :  { %460 = vmatprep.subr.bf16.mxu0 %v557_v0  ;;  %v394_v41 = vld [vmem:[%s655_s6] ss:$0 sm:$0xff] }
  0x26   :  { %443 = vmatpush3.bf16.msra.mxu1 %v487_v7 }
  0x27   :  { %444 = vmatprep.subr.bf16.mxu1 %v557_v0  ;;  %461 = vmatpush3.bf16.msra.mxu0 %v494_v14 }
  0x28   :  { %462 = vmatprep.subr.bf16.mxu0 %v557_v0 }
  0x2a   :  { %445 = vmatpush3.bf16.msra.mxu1 %v488_v8 }
  0x2b   :  { %446 = vmatprep.subr.bf16.mxu1 %v557_v0  ;;  %463 = vmatpush3.bf16.msra.mxu0 %v495_v15 }
  0x2c   :  { %464 = vmatprep.subr.bf16.mxu0 %v557_v0 }
  0x2e   :  { %447 = vmatpush3.bf16.msra.mxu1 %v489_v9 }
  0x2f   :  { %448 = vmatprep.subr.bf16.mxu1 %v557_v0  ;;  %465 = vmatpush3.bf16.msra.mxu0 %v496_v16 }
  0x30   :  { %466 = vmatprep.subr.bf16.mxu0 %v557_v0 }
  0x32   :  { %449 = vmatpush3.bf16.msra.mxu1 %v490_v10 }
  0x33   :  { %450 = vmatprep.subr.bf16.mxu1 %v557_v0  ;;  %467 = vmatpush3.bf16.msra.mxu0 %v497_v17 }
  0x34   :  { %468 = vmatprep.subr.bf16.mxu0 %v557_v0 }
  0x36   :  { %451 = vmatpush3.bf16.msra.mxu1 %v491_v11 }
  0x37   :  { %452 = vmatprep.subr.bf16.mxu1 %v557_v0  ;;  %469 = vmatpush3.bf16.msra.mxu0 %v498_v28 }
  0x38   :  { %470 = vmatprep.subr.bf16.mxu0 %v557_v0 }
  0x3a   :  { %453 = vmatpush3.bf16.msra.mxu1 %v492_v12 }
  0x3b   :  { %471 = vmatpush3.bf16.msra.mxu0 %v499_v29 }
  0x3c   :  { %472 = vmatprep.subr.bf16.mxu0 %v557_v0 }
  0x3f   :  { %473 = vmatpush3.bf16.msra.mxu0 %v500_v30 }
  0xe1   :  { %v111_v19 = vpop.f32.mrf.mxu0 }
  0xe2   :  { %v112_v21 = vadd.f32 %v382_v18, %v111_v19 }
  0xe3   :  { %v436_v20 = vpop.f32.mrf.mxu0 }
  0xe4   :  { %v118_v25 = vmax.f32 %v112_v21, 0.0 }
  0xe5   :  { %v114_v22 = vpop.f32.mrf.mxu0 }
  0xe6   :  { %v115_v23 = vadd.f32 %v382_v18, %v114_v22 }
  0xe7   :  { %v437_v24 = vpop.f32.mrf.mxu0 }
  0xe8   :  { %v119_v26 = vmax.f32 %v115_v23, 0.0 }
  0xea   :  { %v120_v27 = vpack.c.bf16 %v119_v26, %v118_v25 }
  0xec   :  { %455 = vmatmul.mubr.bf16.vlgmr.msra.gmra.mxu1 %v120_v27 }
 0x1ac   :  { %v226_v32 = vpop.f32.mrf.mxu1 }
 0x1ad   :  { %v227_v34 = vadd.f32 %v385_v31, %v226_v32 }
 0x1ae   :  { %v456_v33 = vpop.f32.mrf.mxu1 }
 0x1af   :  { %v233_v38 = vmax.f32 %v227_v34, 0.0 }
 0x1b0   :  { %v229_v35 = vpop.f32.mrf.mxu1 }
 0x1b1   :  { %v230_v36 = vadd.f32 %v385_v31, %v229_v35 }
 0x1b2   :  { %v457_v37 = vpop.f32.mrf.mxu1 }
 0x1b3   :  { %v234_v39 = vmax.f32 %v230_v36, 0.0 }
 0x1b5   :  { %v235_v40 = vpack.c.bf16 %v234_v39, %v233_v38 }
 0x1b7   :  { %475 = vmatmul.mubr.bf16.vlgmr.msra.gmra.mxu0 %v235_v40 }
 0x277   :  { %v341_v42 = vpop.f32.mrf.mxu0 }
 0x278   :  { %v342_v43 = vadd.f32 %v394_v41, %v341_v42 }
 0x279   :  { %v476_v44 = vpop.f32.mrf.mxu0 }
 0x27a   :  { %348 = vmax.xlane.f32.xlu0 %v342_v43 }
 0x27b   :  { %v344_v45 = vpop.f32.mrf.mxu0 }
 0x27c   :  { %v345_v46 = vadd.f32 %v394_v41, %v344_v45 }
 0x27d   :  { %v477_v47 = vpop.f32.mrf.mxu0 }
 0x27e   :  { %350 = vmax.xlane.f32.xlu0 %v345_v46 }
 0x303   :  { %v349_v48 = vpop.xlane.xlu0 %348 }
 0x304   :  { %v352_v49 = vsub.f32 %v342_v43, %v349_v48 }
 0x306   :  { %v354_v50 = vmul.f32 1.442695, %v352_v49 }
 0x307   :  { %v351_v51 = vpop.xlane.xlu0 %350 }
 0x308   :  { %501 = vpow2.f32 %v354_v50  ;;  %v353_v52 = vsub.f32 %v345_v46, %v351_v51 }
 0x30a   :  { %v356_v53 = vmul.f32 1.442695, %v353_v52 }
 0x30c   :  { %503 = vpow2.f32 %v356_v53 }
 0x315   :  { %v502_v54 = vpop.eup %501 }
 0x316   :  { %358 = vadd.xlane.f32.xlu1 %v502_v54 }
 0x319   :  { %v504_v55 = vpop.eup %503 }
 0x31a   :  { %360 = vadd.xlane.f32.xlu1 %v504_v55 }
 0x39f   :  { %v359_v56 = vpop.xlane.xlu1 %358 }
 0x3a0   :  { %505 = vrcp.f32 %v359_v56 }
 0x3a3   :  { %v361_v57 = vpop.xlane.xlu1 %360 }
 0x3a4   :  { %507 = vrcp.f32 %v361_v57 }
 0x3ad   :  { %v506_v58 = vpop.eup %505 }
 0x3ae   :  { %v363_v60 = vmul.f32 %v506_v58, %v502_v54 }
 0x3b1   :  { %v508_v59 = vpop.eup %507 }
 0x3b2   :  { %v365_v61 = vmul.f32 %v508_v59, %v504_v55 }
 0x3b4   :  { %v410_v62 = vpack.c.bf16 %v365_v61, %v363_v60 }
 0x3b6   :  { %411 = vst [vmem:[%s656_s7] sm:$0xff] %v410_v62  }
 0x3b7   :  { %380 = vsyncpa [#allocation3], 1 }
 0x3b8   :  { %381 = vsyncpa [#allocation5], 1 }

</bundles_post_ra>
